<compile_context>
chip_gen: v6e
topology: v6e:2x2x1
jax: 0.10.0
libtpu: 0.0.40
codegen_flags: <defaults>
</compile_context>

<pallas_src>
import numpy as np
import jax
import jax.numpy as jnp
from jax import lax
from jax.experimental import pallas as pl
from jax.experimental.pallas import tpu as pltpu


def _make_kernel(L, m, T, exact):
    L_f = np.float32(L)
    L_i = np.int32(L)

    def _topk_store(a, pf_ref):
        # Iterative mask-argmax top-k over the L sublanes of each lane column.
        row_idx = lax.broadcasted_iota(jnp.int32, (L, T), 0)
        cur = a
        for i in range(m):                                   # m small & static -> unrolled
            vmax = jnp.max(cur, axis=0, keepdims=True)                        # (1, T)
            idx = jnp.min(jnp.where(cur == vmax, row_idx, L_i), axis=0,
                          keepdims=True)                                      # lowest-index tie-break
            f = idx + 1                                                       # 1-based frequency
            # p = ceil(L / f) arithmetically (no table reduce, no int div).
            # f32 divide + floor, then integer fixups make it exact.
            q = jnp.floor(L_f / f.astype(jnp.float32)).astype(jnp.int32)
            q = q - (q * f > L_i).astype(jnp.int32)                           # fix floor overshoot
            q = q + ((q + 1) * f <= L_i).astype(jnp.int32)                    # fix floor undershoot
            p = q + (q * f < L_i).astype(jnp.int32)                           # floor -> ceil
            pf_ref[pl.ds(i, 1), :] = p                                        # merged output: rows [0, m) = p
            pf_ref[pl.ds(m + i, 1), :] = f                                    #                rows [m, 2m) = f
            if i + 1 < m:
                cur = jnp.where(row_idx == idx, -jnp.inf, cur)                # drop selected entry

    if exact:
        # Exact-ranking fallback: single f32 dot per basis at HIGHEST precision.
        def kernel(cos_ref, sin_ref, x_ref, pf_ref):
            x = x_ref[...]
            re = jnp.dot(cos_ref[...], x, preferred_element_type=jnp.float32,
                         precision=lax.Precision.HIGHEST)
            im = jnp.dot(sin_ref[...], x, preferred_element_type=jnp.float32,
                         precision=lax.Precision.HIGHEST)
            _topk_store(re * re + im * im, pf_ref)          # squared |FFT|: same top-k
    else:
        # bf16_3x (Precision.HIGH-equivalent): w @ x ~= wh@xh + wh@xl + wl@xh.
        def kernel(ch_ref, cl_ref, sh_ref, sl_ref, x_ref, pf_ref):
            x = x_ref[...]
            xh = x.astype(jnp.bfloat16)
            xl = (x - xh.astype(jnp.float32)).astype(jnp.bfloat16)

            def dot3(wh_ref, wl_ref):
                wh = wh_ref[...]
                acc = jnp.dot(wh, xh, preferred_element_type=jnp.float32)
                acc = acc + jnp.dot(wh, xl, preferred_element_type=jnp.float32)
                acc = acc + jnp.dot(wl_ref[...], xh, preferred_element_type=jnp.float32)
                return acc

            re = dot3(ch_ref, cl_ref)
            im = dot3(sh_ref, sl_ref)
            _topk_store(re * re + im * im, pf_ref)

    return kernel


def _dft_bases(L, exact):
    # Angles reduced mod L and built in float64 for a faithful DFT basis.
    k = np.arange(L)
    ang = (2.0 * np.pi / L) * ((np.outer(k, k) % L).astype(np.float64))
    cos = jnp.asarray(np.cos(ang), dtype=jnp.float32)
    sin = jnp.asarray(-np.sin(ang), dtype=jnp.float32)
    if exact:
        return [cos, sin]

    def split(w):                                   # hi/lo bf16 split for the 3x decomposition
        hi = w.astype(jnp.bfloat16)
        lo = (w - hi.astype(jnp.float32)).astype(jnp.bfloat16)
        return hi, lo

    ch, cl = split(cos)
    sh, sl = split(sin)
    return [ch, cl, sh, sl]


def _pick_tn(N):
    # Wide lane tiles amortize per-grid-step overhead (v6e roofline), but keep
    # at least 2 grid steps when possible so both v7x TensorCores get work.
    for tn in (512, 256):
        if N >= 2 * tn:
            return tn
    return 128


def _pick_td(B, D):
    # D % 128 == 0 here.  Prefer wide tiles, but keep >= 2 total grid steps
    # when possible (two v7x TensorCores).
    for td in (512, 256, 128):
        if D % td == 0 and B * (D // td) >= 2:
            return td
    for td in (512, 256, 128):
        if D % td == 0:
            return td


def _vmem_limit_bytes(L, T, m, n_basis, basis_itemsize, basis_bufs):
    basis = n_basis * L * L * basis_itemsize * basis_bufs   # resident DFT basis
    x_buf = L * T * 4 * 2                                   # f32 input tile, double-buffered
    out_buf = 2 * m * T * 4 * 2                             # merged int32 output, double-buffered
    temps = 8 * L * T * 4                                   # re/im/|X|^2/iota/mask headroom
    est = basis + x_buf + out_buf + temps
    try:
        cap = int(pltpu.get_tpu_info().vmem_capacity_bytes)
    except Exception:
        cap = 64 << 20                                      # v7x per-core VMEM: safe lower bound
    return max(min(int(est * 1.5), int(cap * 0.9)), 32 << 20)


def local_multi_periodicity_extractor(x, m, return_freqs=False, exact_ranking=False):
    """x: (B, L, D) float -> p: (B, m, D) int32 (and f if return_freqs)."""
    B, L, D = x.shape
    assert 1 <= m <= L, "top-k size m must not exceed the sequence length"

    bases = _dft_bases(L, exact_ranking)
    n_basis = len(bases)
    basis_itemsize = 4 if exact_ranking else 2
    # Single-buffer the grid-invariant basis once it is big enough to matter
    # (halves its resident footprint; key under v7x 64 MiB / v5e 16 MiB scoped VMEM).
    single_buffer_basis = n_basis * L * L * basis_itemsize > (4 << 20)
    basis_kwargs = {"pipeline_mode": pl.Buffered(1)} if single_buffer_basis else {}
    basis_bufs = 1 if single_buffer_basis else 2

    # TODO(synk): for very large L (>= ~1.5-2K) on v7x, K-tile the contraction
    # (extra 'arbitrary' grid axis over L with re/im VMEM accumulators) and/or
    # use the rfft half-basis (k = 0..L/2) with mirrored magnitudes before the
    # top-k; unnecessary at these sizes.
    # TODO(synk): torch returns int64; JAX x64 is off so we emit int32 (values <= L).

    x_f32 = x.astype(jnp.float32)

    if D % 128 == 0:
        # In-place path: no wrapper transpose, no extra HBM pass over x.
        TD = _pick_td(B, D)
        kernel = _make_kernel(L, m, TD, exact_ranking)
        basis_specs = [pl.BlockSpec((L, L), lambda b, j: (0, 0), **basis_kwargs)
                       for _ in range(n_basis)]
        pf = pl.pallas_call(
            kernel,
            out_shape=jax.ShapeDtypeStruct((B, 2 * m, D), jnp.int32),
            grid_spec=pltpu.PrefetchScalarGridSpec(
                num_scalar_prefetch=0,
                grid=(B, D // TD),
                in_specs=basis_specs
                + [pl.BlockSpec((None, L, TD), lambda b, j: (b, 0, j))],
                out_specs=pl.BlockSpec((None, 2 * m, TD), lambda b, j: (b, 0, j)),
            ),
            compiler_params=pltpu.CompilerParams(
                dimension_semantics=("parallel", "parallel"),
                vmem_limit_bytes=_vmem_limit_bytes(L, TD, m, n_basis,
                                                   basis_itemsize, basis_bufs)),
        )(*bases, x_f32)
        p = pf[:, :m, :]
        f = pf[:, m:, :]
    else:
        # Fold batch into the lane dimension: (B, L, D) -> (L, B*D), zero-pad.
        N = B * D
        TN = _pick_tn(N)
        N_pad = -(-N // TN) * TN
        x2 = jnp.transpose(x_f32, (1, 0, 2)).reshape(L, N)
        if N_pad != N:
            x2 = jnp.pad(x2, ((0, 0), (0, N_pad - N)))
        kernel = _make_kernel(L, m, TN, exact_ranking)
        basis_specs = [pl.BlockSpec((L, L), lambda j: (0, 0), **basis_kwargs)
                       for _ in range(n_basis)]
        pf = pl.pallas_call(
            kernel,
            out_shape=jax.ShapeDtypeStruct((2 * m, N_pad), jnp.int32),
            grid_spec=pltpu.PrefetchScalarGridSpec(
                num_scalar_prefetch=0,
                grid=(N_pad // TN,),
                in_specs=basis_specs + [pl.BlockSpec((L, TN), lambda j: (0, j))],
                out_specs=pl.BlockSpec((2 * m, TN), lambda j: (0, j)),
            ),
            compiler_params=pltpu.CompilerParams(
                dimension_semantics=("parallel",),
                vmem_limit_bytes=_vmem_limit_bytes(L, TN, m, n_basis,
                                                   basis_itemsize, basis_bufs)),
        )(*bases, x2)
        p = jnp.transpose(pf[:m, :N].reshape(m, B, D), (1, 0, 2))
        f = jnp.transpose(pf[m:, :N].reshape(m, B, D), (1, 0, 2))

    if return_freqs:
        return p, f
    return p


if __name__ == "__main__":
    def _check(B, L, D, m, key):
        x = jax.random.normal(key, (B, L, D), dtype=jnp.float32)
        p, f = local_multi_periodicity_extractor(x, m, return_freqs=True)
        p = np.asarray(jax.block_until_ready(p))
        f = np.asarray(jax.block_until_ready(f))

        assert p.shape == (B, m, D) and p.dtype == np.int32
        assert f.shape == (B, m, D)

        # 1) p is exactly ceil(L / f) for the selected (1-based) frequencies.
        assert np.array_equal(p, -(-L // f))
        assert np.all((f >= 1) & (f <= L))

        # 2) selected indices are distinct within each (batch, dim) column.
        idx = f - 1
        assert np.all(np.diff(np.sort(idx, axis=1), axis=1) != 0)

        # 3) the selected frequencies carry the top-m FFT magnitudes.
        #    (|X[k]| == |X[L-k]| for real x, so index order inside a conjugate
        #     pair is tie-dependent; comparing magnitudes is the robust check.)
        a_ref = np.abs(np.fft.fft(np.asarray(x), axis=1))            # (B, L, D)
        a_top = np.sort(a_ref, axis=1)[:, ::-1, :][:, :m, :]         # descending (B, m, D)
        a_sel = np.take_along_axis(a_ref, idx, axis=1)               # (B, m, D)
        assert np.allclose(a_sel, a_top, rtol=1e-3, atol=1e-3), "top-k magnitudes mismatch"

    key = jax.random.PRNGKey(0)
    k1, k2 = jax.random.split(key)
    _check(B=2, L=32, D=8, m=3, key=k1)       # folded (lane-packed) path
    _check(B=2, L=16, D=128, m=4, key=k2)     # in-place BlockSpec path (D % 128 == 0)

    print("KERNEL_OK")
</pallas_src>

<mosaic_0001>
module attributes {stable_mosaic.version = 11 : i64} {
  func.func @kernel(%arg0: i32, %arg1: memref<32x32xbf16, #tpu.memory_space<vmem>>, %arg2: memref<32x32xbf16, #tpu.memory_space<vmem>>, %arg3: memref<32x32xbf16, #tpu.memory_space<vmem>>, %arg4: memref<32x32xbf16, #tpu.memory_space<vmem>>, %arg5: memref<32x128xf32, #tpu.memory_space<vmem>>, %arg6: memref<6x128xi32, #tpu.memory_space<vmem>>) attributes {dimension_semantics = [#tpu.dimension_semantics<parallel>], iteration_bounds = array<i64: 1>, scalar_prefetch = 0 : i64, scratch_operands = 0 : i64, tpu.core_type = #tpu.core_type<tc>, window_params = [{pipeline_mode = #tpu.pipeline_mode<synchronous>, transform_indices = @transform_0, window_bounds = array<i64: 32, 32>}, {pipeline_mode = #tpu.pipeline_mode<synchronous>, transform_indices = @transform_1, window_bounds = array<i64: 32, 32>}, {pipeline_mode = #tpu.pipeline_mode<synchronous>, transform_indices = @transform_2, window_bounds = array<i64: 32, 32>}, {pipeline_mode = #tpu.pipeline_mode<synchronous>, transform_indices = @transform_3, window_bounds = array<i64: 32, 32>}, {transform_indices = @transform_4, window_bounds = array<i64: 32, 128>}, {transform_indices = @transform_5, window_bounds = array<i64: 6, 128>}]} {
    %c0 = arith.constant 0 : index
    %c0_0 = arith.constant 0 : index
    %0 = vector.load %arg5[%c0, %c0_0] : memref<32x128xf32, #tpu.memory_space<vmem>>, vector<32x128xf32>
    %1 = arith.truncf %0 : vector<32x128xf32> to vector<32x128xbf16>
    %2 = arith.extf %1 : vector<32x128xbf16> to vector<32x128xf32>
    %3 = arith.subf %0, %2 : vector<32x128xf32>
    %4 = arith.truncf %3 : vector<32x128xf32> to vector<32x128xbf16>
    %c0_1 = arith.constant 0 : index
    %c0_2 = arith.constant 0 : index
    %5 = vector.load %arg1[%c0_1, %c0_2] : memref<32x32xbf16, #tpu.memory_space<vmem>>, vector<32x32xbf16>
    %cst = arith.constant dense<0.000000e+00> : vector<32x128xf32>
    %6 = tpu.matmul %5, %1, %cst {dimension_numbers = #tpu.dot_dimension_numbers<[1], [0], [0], [1], [0, 0, 1, 1], [], []>} : vector<32x32xbf16>, vector<32x128xbf16>, vector<32x128xf32> -> vector<32x128xf32>
    %cst_3 = arith.constant dense<0.000000e+00> : vector<32x128xf32>
    %7 = tpu.matmul %5, %4, %cst_3 {dimension_numbers = #tpu.dot_dimension_numbers<[1], [0], [0], [1], [0, 0, 1, 1], [], []>} : vector<32x32xbf16>, vector<32x128xbf16>, vector<32x128xf32> -> vector<32x128xf32>
    %8 = arith.addf %6, %7 : vector<32x128xf32>
    %c0_4 = arith.constant 0 : index
    %c0_5 = arith.constant 0 : index
    %9 = vector.load %arg2[%c0_4, %c0_5] : memref<32x32xbf16, #tpu.memory_space<vmem>>, vector<32x32xbf16>
    %cst_6 = arith.constant dense<0.000000e+00> : vector<32x128xf32>
    %10 = tpu.matmul %9, %1, %cst_6 {dimension_numbers = #tpu.dot_dimension_numbers<[1], [0], [0], [1], [0, 0, 1, 1], [], []>} : vector<32x32xbf16>, vector<32x128xbf16>, vector<32x128xf32> -> vector<32x128xf32>
    %11 = arith.addf %8, %10 : vector<32x128xf32>
    %c0_7 = arith.constant 0 : index
    %c0_8 = arith.constant 0 : index
    %12 = vector.load %arg3[%c0_7, %c0_8] : memref<32x32xbf16, #tpu.memory_space<vmem>>, vector<32x32xbf16>
    %cst_9 = arith.constant dense<0.000000e+00> : vector<32x128xf32>
    %13 = tpu.matmul %12, %1, %cst_9 {dimension_numbers = #tpu.dot_dimension_numbers<[1], [0], [0], [1], [0, 0, 1, 1], [], []>} : vector<32x32xbf16>, vector<32x128xbf16>, vector<32x128xf32> -> vector<32x128xf32>
    %cst_10 = arith.constant dense<0.000000e+00> : vector<32x128xf32>
    %14 = tpu.matmul %12, %4, %cst_10 {dimension_numbers = #tpu.dot_dimension_numbers<[1], [0], [0], [1], [0, 0, 1, 1], [], []>} : vector<32x32xbf16>, vector<32x128xbf16>, vector<32x128xf32> -> vector<32x128xf32>
    %15 = arith.addf %13, %14 : vector<32x128xf32>
    %c0_11 = arith.constant 0 : index
    %c0_12 = arith.constant 0 : index
    %16 = vector.load %arg4[%c0_11, %c0_12] : memref<32x32xbf16, #tpu.memory_space<vmem>>, vector<32x32xbf16>
    %cst_13 = arith.constant dense<0.000000e+00> : vector<32x128xf32>
    %17 = tpu.matmul %16, %1, %cst_13 {dimension_numbers = #tpu.dot_dimension_numbers<[1], [0], [0], [1], [0, 0, 1, 1], [], []>} : vector<32x32xbf16>, vector<32x128xbf16>, vector<32x128xf32> -> vector<32x128xf32>
    %18 = arith.addf %15, %17 : vector<32x128xf32>
    %19 = arith.mulf %11, %11 : vector<32x128xf32>
    %20 = arith.mulf %18, %18 : vector<32x128xf32>
    %21 = arith.addf %19, %20 : vector<32x128xf32>
    %22 = tpu.iota {dimensions = array<i32: 0>} : vector<32x128xi32>
    %cst_14 = arith.constant dense<0xFF800000> : vector<128xf32>
    %23 = vector.multi_reduction <maximumf>, %21, %cst_14 [0] : vector<32x128xf32> to vector<128xf32>
    %24 = vector.shape_cast %23 : vector<128xf32> to vector<1x128xf32>
    %25 = vector.broadcast %24 : vector<1x128xf32> to vector<32x128xf32>
    %26 = arith.cmpf oeq, %21, %25 : vector<32x128xf32>
    %c32_i32 = arith.constant 32 : i32
    %27 = vector.broadcast %c32_i32 : i32 to vector<32x128xi32>
    %28 = arith.select %26, %22, %27 : vector<32x128xi1>, vector<32x128xi32>
    %cst_15 = arith.constant dense<2147483647> : vector<128xi32>
    %29 = vector.multi_reduction <minsi>, %28, %cst_15 [0] : vector<32x128xi32> to vector<128xi32>
    %30 = vector.shape_cast %29 : vector<128xi32> to vector<1x128xi32>
    %c1_i32 = arith.constant 1 : i32
    %31 = vector.broadcast %c1_i32 : i32 to vector<1x128xi32>
    %32 = arith.addi %30, %31 : vector<1x128xi32>
    %33 = arith.sitofp %32 : vector<1x128xi32> to vector<1x128xf32>
    %cst_16 = arith.constant 3.200000e+01 : f32
    %34 = vector.broadcast %cst_16 : f32 to vector<1x128xf32>
    %35 = arith.divf %34, %33 : vector<1x128xf32>
    %36 = math.floor %35 : vector<1x128xf32>
    %37 = arith.fptosi %36 : vector<1x128xf32> to vector<1x128xi32>
    %38 = arith.muli %37, %32 : vector<1x128xi32>
    %c32_i32_17 = arith.constant 32 : i32
    %39 = vector.broadcast %c32_i32_17 : i32 to vector<1x128xi32>
    %40 = arith.cmpi sgt, %38, %39 : vector<1x128xi32>
    %41 = arith.extui %40 : vector<1x128xi1> to vector<1x128xi32>
    %42 = arith.subi %37, %41 : vector<1x128xi32>
    %c1_i32_18 = arith.constant 1 : i32
    %43 = vector.broadcast %c1_i32_18 : i32 to vector<1x128xi32>
    %44 = arith.addi %42, %43 : vector<1x128xi32>
    %45 = arith.muli %44, %32 : vector<1x128xi32>
    %c32_i32_19 = arith.constant 32 : i32
    %46 = vector.broadcast %c32_i32_19 : i32 to vector<1x128xi32>
    %47 = arith.cmpi sle, %45, %46 : vector<1x128xi32>
    %48 = arith.extui %47 : vector<1x128xi1> to vector<1x128xi32>
    %49 = arith.addi %42, %48 : vector<1x128xi32>
    %50 = arith.muli %49, %32 : vector<1x128xi32>
    %c32_i32_20 = arith.constant 32 : i32
    %51 = vector.broadcast %c32_i32_20 : i32 to vector<1x128xi32>
    %52 = arith.cmpi slt, %50, %51 : vector<1x128xi32>
    %53 = arith.extui %52 : vector<1x128xi1> to vector<1x128xi32>
    %54 = arith.addi %49, %53 : vector<1x128xi32>
    %c0_21 = arith.constant 0 : index
    %c0_22 = arith.constant 0 : index
    %55 = vector.load %arg6[%c0_21, %c0_22] : memref<6x128xi32, #tpu.memory_space<vmem>>, vector<1x128xi32>
    tpu.vector_store %arg6[%c0_21, %c0_22], %54 {strides = array<i32>} : memref<6x128xi32, #tpu.memory_space<vmem>>, vector<1x128xi32>,
    %c3 = arith.constant 3 : index
    %c0_23 = arith.constant 0 : index
    %56 = vector.load %arg6[%c3, %c0_23] : memref<6x128xi32, #tpu.memory_space<vmem>>, vector<1x128xi32>
    tpu.vector_store %arg6[%c3, %c0_23], %32 {strides = array<i32>} : memref<6x128xi32, #tpu.memory_space<vmem>>, vector<1x128xi32>,
    %57 = vector.broadcast %30 : vector<1x128xi32> to vector<32x128xi32>
    %58 = arith.cmpi eq, %22, %57 : vector<32x128xi32>
    %cst_24 = arith.constant 0xFF800000 : f32
    %59 = vector.broadcast %cst_24 : f32 to vector<32x128xf32>
    %60 = arith.select %58, %59, %21 : vector<32x128xi1>, vector<32x128xf32>
    %cst_25 = arith.constant dense<0xFF800000> : vector<128xf32>
    %61 = vector.multi_reduction <maximumf>, %60, %cst_25 [0] : vector<32x128xf32> to vector<128xf32>
    %62 = vector.shape_cast %61 : vector<128xf32> to vector<1x128xf32>
    %63 = vector.broadcast %62 : vector<1x128xf32> to vector<32x128xf32>
    %64 = arith.cmpf oeq, %60, %63 : vector<32x128xf32>
    %c32_i32_26 = arith.constant 32 : i32
    %65 = vector.broadcast %c32_i32_26 : i32 to vector<32x128xi32>
    %66 = arith.select %64, %22, %65 : vector<32x128xi1>, vector<32x128xi32>
    %cst_27 = arith.constant dense<2147483647> : vector<128xi32>
    %67 = vector.multi_reduction <minsi>, %66, %cst_27 [0] : vector<32x128xi32> to vector<128xi32>
    %68 = vector.shape_cast %67 : vector<128xi32> to vector<1x128xi32>
    %c1_i32_28 = arith.constant 1 : i32
    %69 = vector.broadcast %c1_i32_28 : i32 to vector<1x128xi32>
    %70 = arith.addi %68, %69 : vector<1x128xi32>
    %71 = arith.sitofp %70 : vector<1x128xi32> to vector<1x128xf32>
    %cst_29 = arith.constant 3.200000e+01 : f32
    %72 = vector.broadcast %cst_29 : f32 to vector<1x128xf32>
    %73 = arith.divf %72, %71 : vector<1x128xf32>
    %74 = math.floor %73 : vector<1x128xf32>
    %75 = arith.fptosi %74 : vector<1x128xf32> to vector<1x128xi32>
    %76 = arith.muli %75, %70 : vector<1x128xi32>
    %c32_i32_30 = arith.constant 32 : i32
    %77 = vector.broadcast %c32_i32_30 : i32 to vector<1x128xi32>
    %78 = arith.cmpi sgt, %76, %77 : vector<1x128xi32>
    %79 = arith.extui %78 : vector<1x128xi1> to vector<1x128xi32>
    %80 = arith.subi %75, %79 : vector<1x128xi32>
    %c1_i32_31 = arith.constant 1 : i32
    %81 = vector.broadcast %c1_i32_31 : i32 to vector<1x128xi32>
    %82 = arith.addi %80, %81 : vector<1x128xi32>
    %83 = arith.muli %82, %70 : vector<1x128xi32>
    %c32_i32_32 = arith.constant 32 : i32
    %84 = vector.broadcast %c32_i32_32 : i32 to vector<1x128xi32>
    %85 = arith.cmpi sle, %83, %84 : vector<1x128xi32>
    %86 = arith.extui %85 : vector<1x128xi1> to vector<1x128xi32>
    %87 = arith.addi %80, %86 : vector<1x128xi32>
    %88 = arith.muli %87, %70 : vector<1x128xi32>
    %c32_i32_33 = arith.constant 32 : i32
    %89 = vector.broadcast %c32_i32_33 : i32 to vector<1x128xi32>
    %90 = arith.cmpi slt, %88, %89 : vector<1x128xi32>
    %91 = arith.extui %90 : vector<1x128xi1> to vector<1x128xi32>
    %92 = arith.addi %87, %91 : vector<1x128xi32>
    %c1 = arith.constant 1 : index
    %c0_34 = arith.constant 0 : index
    %93 = vector.load %arg6[%c1, %c0_34] : memref<6x128xi32, #tpu.memory_space<vmem>>, vector<1x128xi32>
    tpu.vector_store %arg6[%c1, %c0_34], %92 {strides = array<i32>} : memref<6x128xi32, #tpu.memory_space<vmem>>, vector<1x128xi32>,
    %c4 = arith.constant 4 : index
    %c0_35 = arith.constant 0 : index
    %94 = vector.load %arg6[%c4, %c0_35] : memref<6x128xi32, #tpu.memory_space<vmem>>, vector<1x128xi32>
    tpu.vector_store %arg6[%c4, %c0_35], %70 {strides = array<i32>} : memref<6x128xi32, #tpu.memory_space<vmem>>, vector<1x128xi32>,
    %95 = vector.broadcast %68 : vector<1x128xi32> to vector<32x128xi32>
    %96 = arith.cmpi eq, %22, %95 : vector<32x128xi32>
    %cst_36 = arith.constant 0xFF800000 : f32
    %97 = vector.broadcast %cst_36 : f32 to vector<32x128xf32>
    %98 = arith.select %96, %97, %60 : vector<32x128xi1>, vector<32x128xf32>
    %cst_37 = arith.constant dense<0xFF800000> : vector<128xf32>
    %99 = vector.multi_reduction <maximumf>, %98, %cst_37 [0] : vector<32x128xf32> to vector<128xf32>
    %100 = vector.shape_cast %99 : vector<128xf32> to vector<1x128xf32>
    %101 = vector.broadcast %100 : vector<1x128xf32> to vector<32x128xf32>
    %102 = arith.cmpf oeq, %98, %101 : vector<32x128xf32>
    %c32_i32_38 = arith.constant 32 : i32
    %103 = vector.broadcast %c32_i32_38 : i32 to vector<32x128xi32>
    %104 = arith.select %102, %22, %103 : vector<32x128xi1>, vector<32x128xi32>
    %cst_39 = arith.constant dense<2147483647> : vector<128xi32>
    %105 = vector.multi_reduction <minsi>, %104, %cst_39 [0] : vector<32x128xi32> to vector<128xi32>
    %106 = vector.shape_cast %105 : vector<128xi32> to vector<1x128xi32>
    %c1_i32_40 = arith.constant 1 : i32
    %107 = vector.broadcast %c1_i32_40 : i32 to vector<1x128xi32>
    %108 = arith.addi %106, %107 : vector<1x128xi32>
    %109 = arith.sitofp %108 : vector<1x128xi32> to vector<1x128xf32>
    %cst_41 = arith.constant 3.200000e+01 : f32
    %110 = vector.broadcast %cst_41 : f32 to vector<1x128xf32>
    %111 = arith.divf %110, %109 : vector<1x128xf32>
    %112 = math.floor %111 : vector<1x128xf32>
    %113 = arith.fptosi %112 : vector<1x128xf32> to vector<1x128xi32>
    %114 = arith.muli %113, %108 : vector<1x128xi32>
    %c32_i32_42 = arith.constant 32 : i32
    %115 = vector.broadcast %c32_i32_42 : i32 to vector<1x128xi32>
    %116 = arith.cmpi sgt, %114, %115 : vector<1x128xi32>
    %117 = arith.extui %116 : vector<1x128xi1> to vector<1x128xi32>
    %118 = arith.subi %113, %117 : vector<1x128xi32>
    %c1_i32_43 = arith.constant 1 : i32
    %119 = vector.broadcast %c1_i32_43 : i32 to vector<1x128xi32>
    %120 = arith.addi %118, %119 : vector<1x128xi32>
    %121 = arith.muli %120, %108 : vector<1x128xi32>
    %c32_i32_44 = arith.constant 32 : i32
    %122 = vector.broadcast %c32_i32_44 : i32 to vector<1x128xi32>
    %123 = arith.cmpi sle, %121, %122 : vector<1x128xi32>
    %124 = arith.extui %123 : vector<1x128xi1> to vector<1x128xi32>
    %125 = arith.addi %118, %124 : vector<1x128xi32>
    %126 = arith.muli %125, %108 : vector<1x128xi32>
    %c32_i32_45 = arith.constant 32 : i32
    %127 = vector.broadcast %c32_i32_45 : i32 to vector<1x128xi32>
    %128 = arith.cmpi slt, %126, %127 : vector<1x128xi32>
    %129 = arith.extui %128 : vector<1x128xi1> to vector<1x128xi32>
    %130 = arith.addi %125, %129 : vector<1x128xi32>
    %c2 = arith.constant 2 : index
    %c0_46 = arith.constant 0 : index
    %131 = vector.load %arg6[%c2, %c0_46] : memref<6x128xi32, #tpu.memory_space<vmem>>, vector<1x128xi32>
    tpu.vector_store %arg6[%c2, %c0_46], %130 {strides = array<i32>} : memref<6x128xi32, #tpu.memory_space<vmem>>, vector<1x128xi32>,
    %c5 = arith.constant 5 : index
    %c0_47 = arith.constant 0 : index
    %132 = vector.load %arg6[%c5, %c0_47] : memref<6x128xi32, #tpu.memory_space<vmem>>, vector<1x128xi32>
    tpu.vector_store %arg6[%c5, %c0_47], %108 {strides = array<i32>} : memref<6x128xi32, #tpu.memory_space<vmem>>, vector<1x128xi32>,
    return
  }
  func.func @transform_0(%arg0: i32) -> (i32, i32) {
    %c0_i32 = arith.constant 0 : i32
    %c0_i32_0 = arith.constant 0 : i32
    %c0_i32_1 = arith.constant 0 : i32
    return %c0_i32, %c0_i32_0 : i32, i32
  }
  func.func @transform_1(%arg0: i32) -> (i32, i32) {
    %c0_i32 = arith.constant 0 : i32
    %c0_i32_0 = arith.constant 0 : i32
    %c0_i32_1 = arith.constant 0 : i32
    return %c0_i32, %c0_i32_0 : i32, i32
  }
  func.func @transform_2(%arg0: i32) -> (i32, i32) {
    %c0_i32 = arith.constant 0 : i32
    %c0_i32_0 = arith.constant 0 : i32
    %c0_i32_1 = arith.constant 0 : i32
    return %c0_i32, %c0_i32_0 : i32, i32
  }
  func.func @transform_3(%arg0: i32) -> (i32, i32) {
    %c0_i32 = arith.constant 0 : i32
    %c0_i32_0 = arith.constant 0 : i32
    %c0_i32_1 = arith.constant 0 : i32
    return %c0_i32, %c0_i32_0 : i32, i32
  }
  func.func @transform_4(%arg0: i32) -> (i32, i32) {
    %c0_i32 = arith.constant 0 : i32
    %c0_i32_0 = arith.constant 0 : i32
    return %c0_i32, %arg0 : i32, i32
  }
  func.func @transform_5(%arg0: i32) -> (i32, i32) {
    %c0_i32 = arith.constant 0 : i32
    %c0_i32_0 = arith.constant 0 : i32
    return %c0_i32, %arg0 : i32, i32
  }
}

</mosaic_0001>

<bundles_post_ra>
// kernel: tpu_custom_call.1
= control target key start
LH: loop header
LB: loop body
LE: loop exit
PB: predicated region body
PF: predicated region fallthrough
CT: control target
= control target key end

     0   :  { %10 = vsyncpa [#allocation3], 0  ;;  %s1086_s0 = inlined_call_operand.hbm [shape: bf16[32,32], index: 0, kind: input, shape index: {}]   ;;  %s1087_s1 = inlined_call_operand.hbm [shape: bf16[32,32], index: 1, kind: input, shape index: {}]   ;;  %s1088_s2 = inlined_call_operand.hbm [shape: bf16[32,32], index: 2, kind: input, shape index: {}]   ;;  %s1089_s3 = inlined_call_operand.hbm [shape: bf16[32,32], index: 3, kind: input, shape index: {}]   ;;  %s1090_s4 = inlined_call_operand.hbm [shape: f32[32,128], index: 4, kind: input, shape index: {}]   ;;  %s1091_s5 = inlined_call_operand.hbm [shape: s32[6,128], index: 5, kind: output, shape index: {}]  }
   0x1   :  { %11 = vsyncpa [#allocation6], 0 }
   0x2   :  { %12 = vsyncpa [#allocation9], 0 }
   0x3   :  { %13 = vsyncpa [#allocation4], 0  ;;  %s949_s18 = smov [#allocation5]   ;;  %s950_s20 = smov [#allocation8]  }
   0x4   :  { %s31_s19 = sshll.u32 %s949_s18, 4  ;;  %s55_s21 = sshll.u32 %s950_s20, 4  ;;  %s32_s19 = int_to_ptr.vmem [resolvable:$true] %s31_s19  ;;  %s56_s21 = int_to_ptr.vmem [resolvable:$true] %s55_s21 }
   0x5   :  { %s829_s22 = scalar_lea.vmem %s32_s19, 256  ;;  %p834_p1 = scmp.lt.s32.totalorder %s32_s19, %s32_s19 }
   0x6   :  { %p830_p0 = scmp.ne.s32.totalorder %s32_s19, %s829_s22  ;;  %p835_p2 = scmp.lt.s32.totalorder %s829_s22, %s829_s22 }
   0x8   :  { %p836_p3 = por %p835_p2, %p834_p1 }
   0xa   :  { %p837_p4 = pnand %p836_p3, %p830_p0 }
   0xc   :  { %840 = shalt.err (!%p837_p4)
}
   0xd   :  { %s951_s23 = smov 64   ;;  %s952_s24 = smov 4  }
   0xe   :  { %37 = dma.hbm_to_vmem [thread:$0]  %s1087_s1, 256, %s32_s19, [#allocation6], %s951_s23, %s951_s23, %s952_s24  }
   0xf   :  { %s849_s27 = scalar_lea.vmem %s56_s21, 256  ;;  %p854_p6 = scmp.lt.s32.totalorder %s56_s21, %s56_s21 }
  0x10   :  { %p850_p5 = scmp.ne.s32.totalorder %s56_s21, %s849_s27  ;;  %p855_p7 = scmp.lt.s32.totalorder %s849_s27, %s849_s27 }
  0x12   :  { %p856_p8 = por %p855_p7, %p854_p6 }
  0x14   :  { %p857_p9 = pnand %p856_p8, %p850_p5 }
  0x16   :  { %860 = shalt.err (!%p857_p9)
}
  0x17   :  { %61 = dma.hbm_to_vmem [thread:$0]  %s1089_s3, 256, %s56_s21, [#allocation9], %s951_s23, %s951_s23, %s952_s24  }
  0x18   :  { %s953_s30 = smov [#allocation2]   ;;  %s954_s7 = smov [#allocation7]  }
  0x19   :  { %s19_s6 = sshll.u32 %s953_s30, 4  ;;  %s43_s8 = sshll.u32 %s954_s7, 4  ;;  %s20_s6 = int_to_ptr.vmem [resolvable:$true] %s19_s6  ;;  %s44_s8 = int_to_ptr.vmem [resolvable:$true] %s43_s8 }
  0x1a   :  { %s869_s1 = scalar_lea.vmem %s20_s6, 256  ;;  %p874_p11 = scmp.lt.s32.totalorder %s20_s6, %s20_s6 }
  0x1b   :  { %p870_p10 = scmp.ne.s32.totalorder %s20_s6, %s869_s1  ;;  %p875_p12 = scmp.lt.s32.totalorder %s869_s1, %s869_s1 }
  0x1d   :  { %p876_p13 = por %p875_p12, %p874_p11 }
  0x1f   :  { %p877_p0 = pnand %p876_p13, %p870_p10 }
  0x21   :  { %880 = shalt.err (!%p877_p0)
}
  0x22   :  { %25 = dma.hbm_to_vmem [thread:$0]  %s1086_s0, 256, %s20_s6, [#allocation3], %s951_s23, %s951_s23, %s952_s24  }
  0x23   :  { %s889_s3 = scalar_lea.vmem %s44_s8, 256  ;;  %p894_p2 = scmp.lt.s32.totalorder %s44_s8, %s44_s8 }
  0x24   :  { %p890_p1 = scmp.ne.s32.totalorder %s44_s8, %s889_s3  ;;  %p895_p3 = scmp.lt.s32.totalorder %s889_s3, %s889_s3 }
  0x26   :  { %p896_p4 = por %p895_p3, %p894_p2 }
  0x28   :  { %p897_p5 = pnand %p896_p4, %p890_p1 }
  0x2a   :  { %900 = shalt.err (!%p897_p5)
}
  0x2b   :  { %49 = dma.hbm_to_vmem [thread:$0]  %s1088_s2, 256, %s44_s8, [#allocation6], %s951_s23, %s951_s23, %s952_s24  }
  0x2c   :  { %s955_s13 = smov [#allocation10]  }
  0x2d   :  { %s67_s14 = sshll.u32 %s955_s13, 4  ;;  %s68_s14 = int_to_ptr.vmem [resolvable:$true] %s67_s14 }
  0x2e   :  { %s909_s15 = scalar_lea.vmem %s68_s14, 512  ;;  %p914_p7 = scmp.lt.s32.totalorder %s68_s14, %s68_s14 }
  0x2f   :  { %p910_p6 = scmp.ne.s32.totalorder %s68_s14, %s909_s15  ;;  %p915_p8 = scmp.lt.s32.totalorder %s909_s15, %s909_s15 }
  0x31   :  { %p916_p9 = por %p915_p8, %p914_p7 }
  0x33   :  { %p917_p10 = pnand %p916_p9, %p910_p6 }
  0x35   :  { %920 = shalt.err (!%p917_p10)
}
  0x36   :  { %s956_s0 = smov 128   ;;  %s957_s16 = smov 8  }
  0x37   :  { %73 = dma.hbm_to_vmem [thread:$0]  %s1090_s4, 512, %s68_s14, [#allocation9], %s956_s0, %s956_s0, %s957_s16  }
  0x38   :  { %941 = dma.done.wait [#allocation3], 256  }
  0x39   :  { %942 = vsyncadd [#allocation3], 4294967040 }
  0x3a   :  { %943 = dma.done.wait [#allocation6], 512  }
  0x3b   :  { %944 = vsyncadd [#allocation6], 4294966784 }
  0x3c   :  { %945 = dma.done.wait [#allocation9], 768  }
  0x3d   :  { %946 = vsyncadd [#allocation9], 4294966528  ;;  %v92_v0 = vld [vmem:[#allocation10 + $0x10] sm:$0xff]  ;;  %v93_v1 = vld [vmem:[#allocation10 + $0x18] sm:$0xff]  ;;  %vm120_vm0 = vcmask 261120   ;;  %s959_s2 = smov [#allocation11]  }
  0x3e   :  { %v90_v2 = vld [vmem:[#allocation10] sm:$0xff]  ;;  %v95_v3 = vpack.c.bf16 %v93_v1, %v92_v0  ;;  %v91_v4 = vld [vmem:[#allocation10 + $0x8] sm:$0xff]  ;;  %v811_v19 = vld [vmem:[#allocation5] sm:$0xff]   ;;  %s687_s4 = sshll.u32 %s959_s2, 4  ;;  %s688_s4 = int_to_ptr.vmem [resolvable:$true] %s687_s4 }
  0x3f   :  { %v94_v5 = vpack.c.bf16 %v91_v4, %v90_v2  ;;  %v807_v6 = vld [vmem:[#allocation2] sm:$0xff]   ;;  %v808_v16 = vld [vmem:[#allocation2 + $0x8] sm:$0xff]   ;;  %v813_v21 = vld [vmem:[#allocation8] sm:$0xff]   ;;  %s921_s19 = scalar_lea.vmem %s688_s4, 128  ;;  %p926_p12 = scmp.lt.s32.totalorder %s688_s4, %s688_s4 }
  0x40   :  { %750 = vmatprep.subr.bf16.mxu1 %v95_v3  ;;  %v98_v7 = vunpack.c.l.bf16 %v95_v3  ;;  %v99_v8 = vunpack.c.h.bf16 %v95_v3  ;;  %754 = vmatprep.mubr.msk.bf16.mxu1 %vm120_vm0, %v807_v6  ;;  %v809_v18 = vld [vmem:[#allocation7] sm:$0xff]   ;;  %v810_v20 = vld [vmem:[#allocation7 + $0x8] sm:$0xff]   ;;  %v812_v22 = vld [vmem:[#allocation5 + $0x8] sm:$0xff]   ;;  %p922_p11 = scmp.ne.s32.totalorder %s688_s4, %s921_s19  ;;  %p927_p13 = scmp.lt.s32.totalorder %s921_s19, %s921_s19 }
  0x41   :  { %751 = vmatpush3.bf16.msra.mxu1 %v95_v3  ;;  %v96_v9 = vunpack.c.l.bf16 %v94_v5  ;;  %v97_v10 = vunpack.c.h.bf16 %v94_v5  ;;  %746 = vmatprep.mubr.msk.bf16.mxu0 %vm120_vm0, %v807_v6  ;;  %v814_v23 = vld [vmem:[#allocation8 + $0x8] sm:$0xff]  }
  0x42   :  { %v102_v11 = vsub.f32 %v92_v0, %v98_v7  ;;  %v103_v12 = vsub.f32 %v93_v1, %v99_v8  ;;  %752 = vmatprep.subr.bf16.mxu1 %v94_v5  ;;  %p928_p0 = por %p927_p13, %p926_p12 }
  0x43   :  { %v100_v13 = vsub.f32 %v90_v2, %v96_v9  ;;  %v101_v14 = vsub.f32 %v91_v4, %v97_v10 }
  0x44   :  { %v105_v15 = vpack.c.bf16 %v103_v12, %v102_v11  ;;  %p929_p1 = pnand %p928_p0, %p922_p11 }
  0x45   :  { %753 = vmatpush3.bf16.msra.mxu1 %v94_v5  ;;  %v104_v17 = vpack.c.bf16 %v101_v14, %v100_v13 }
  0x46   :  { %742 = vmatprep.subr.bf16.mxu0 %v105_v15  ;;  %766 = vmatprep.subr.bf16.mxu1 %v105_v15 }
  0x47   :  { %743 = vmatpush3.bf16.msra.mxu0 %v105_v15 }
  0x48   :  { %744 = vmatprep.subr.bf16.mxu0 %v104_v17  ;;  %755 = vmatmul.mubr.msk.bf16.vlgmr.msra.gmra.mxu1 %vm120_vm0, %v808_v16 }
  0x49   :  { %767 = vmatpush3.bf16.msra.mxu1 %v105_v15  ;;  %770 = vmatprep.mubr.msk.bf16.mxu1 %vm120_vm0, %v809_v18 }
  0x4a   :  { %768 = vmatprep.subr.bf16.mxu1 %v104_v17 }
  0x4b   :  { %745 = vmatpush3.bf16.msra.mxu0 %v104_v17 }
  0x4c   :  { %758 = vmatprep.subr.bf16.mxu0 %v95_v3 }
  0x4d   :  { %769 = vmatpush3.bf16.msra.mxu1 %v104_v17 }
  0x4e   :  { %747 = vmatmul.mubr.msk.bf16.vlgmr.msra.gmra.mxu0 %vm120_vm0, %v808_v16  ;;  %782 = vmatprep.subr.bf16.mxu1 %v95_v3  ;;  %v501_v16 = vlaneseq }
  0x4f   :  { %759 = vmatpush3.bf16.msra.mxu0 %v95_v3  ;;  %762 = vmatprep.mubr.msk.bf16.mxu0 %vm120_vm0, %v811_v19 }
  0x50   :  { %760 = vmatprep.subr.bf16.mxu0 %v94_v5  ;;  %771 = vmatmul.mubr.msk.bf16.vlgmr.msra.gmra.mxu1 %vm120_vm0, %v810_v20  ;;  %v1029_v19 = vshrl.u32 %v501_v16, 7 }
  0x51   :  { %783 = vmatpush3.bf16.msra.mxu1 %v95_v3  ;;  %786 = vmatprep.mubr.msk.bf16.mxu1 %vm120_vm0, %v813_v21 }
  0x52   :  { %784 = vmatprep.subr.bf16.mxu1 %v94_v5 }
  0x53   :  { %761 = vmatpush3.bf16.msra.mxu0 %v94_v5 }
  0x54   :  { %774 = vmatprep.subr.bf16.mxu0 %v95_v3 }
  0x55   :  { %785 = vmatpush3.bf16.msra.mxu1 %v94_v5 }
  0x56   :  { %763 = vmatmul.mubr.msk.bf16.vlgmr.msra.gmra.mxu0 %vm120_vm0, %v812_v22  ;;  %v1032_v22 = vadd.s32 8, %v1029_v19 }
  0x57   :  { %775 = vmatpush3.bf16.msra.mxu0 %v95_v3  ;;  %778 = vmatprep.mubr.msk.bf16.mxu0 %vm120_vm0, %v809_v18 }
  0x58   :  { %776 = vmatprep.subr.bf16.mxu0 %v94_v5  ;;  %787 = vmatmul.mubr.msk.bf16.vlgmr.msra.gmra.mxu1 %vm120_vm0, %v814_v23  ;;  %v1035_v23 = vadd.s32 16, %v1029_v19 }
  0x5b   :  { %777 = vmatpush3.bf16.msra.mxu0 %v94_v5 }
  0x5e   :  { %779 = vmatmul.mubr.msk.bf16.vlgmr.msra.gmra.mxu0 %vm120_vm0, %v810_v20 }
 0x108   :  { %v756_v24 = vpop.f32.mrf.mxu1 }
 0x10a   :  { %v210_v25 = vpop.f32.mrf.mxu1 }
 0x10c   :  { %v757_v26 = vpop.f32.mrf.mxu1 }
 0x10e   :  { %v748_v27 = vpop.f32.mrf.mxu0  ;;  %v213_v28 = vpop.f32.mrf.mxu1 }
 0x10f   :  { %v219_v47 = vadd.f32 %v756_v24, %v748_v27  ;;  %v1038_v24 = vadd.s32 24, %v1029_v19 }
 0x110   :  { %v161_v29 = vpop.f32.mrf.mxu0  ;;  %v772_v30 = vpop.f32.mrf.mxu1 }
 0x111   :  { %v211_v48 = vadd.f32 %v210_v25, %v161_v29 }
 0x112   :  { %v749_v31 = vpop.f32.mrf.mxu0  ;;  %v352_v32 = vpop.f32.mrf.mxu1 }
 0x113   :  { %v222_v44 = vadd.f32 %v757_v26, %v749_v31 }
 0x114   :  { %v164_v33 = vpop.f32.mrf.mxu0  ;;  %v773_v34 = vpop.f32.mrf.mxu1 }
 0x115   :  { %v214_v52 = vadd.f32 %v213_v28, %v164_v33 }
 0x116   :  { %v764_v35 = vpop.f32.mrf.mxu0  ;;  %v355_v36 = vpop.f32.mrf.mxu1 }
 0x117   :  { %v296_v56 = vadd.f32 %v764_v35, %v219_v47 }
 0x118   :  { %v279_v37 = vpop.f32.mrf.mxu0  ;;  %v788_v39 = vpop.f32.mrf.mxu1 }
 0x119   :  { %v294_v58 = vadd.f32 %v279_v37, %v211_v48  ;;  %v491_v4 = vmul.f32 %v296_v56, %v296_v56 }
 0x11a   :  { %v765_v38 = vpop.f32.mrf.mxu0  ;;  %v470_v41 = vpop.f32.mrf.mxu1 }
 0x11b   :  { %v297_v49 = vadd.f32 %v765_v38, %v222_v44  ;;  %v489_v5 = vmul.f32 %v294_v58, %v294_v58 }
 0x11c   :  { %v282_v40 = vpop.f32.mrf.mxu0  ;;  %v789_v50 = vpop.f32.mrf.mxu1 }
 0x11d   :  { %v295_v59 = vadd.f32 %v282_v40, %v214_v52  ;;  %v492_v62 = vmul.f32 %v297_v49, %v297_v49 }
 0x11e   :  { %v780_v42 = vpop.f32.mrf.mxu0  ;;  %v473_v63 = vpop.f32.mrf.mxu1 }
 0x11f   :  { %v410_v43 = vadd.f32 %v780_v42, %v772_v30  ;;  %v490_v6 = vmul.f32 %v295_v59, %v295_v59 }
 0x120   :  { %v401_v45 = vpop.f32.mrf.mxu0 }
 0x121   :  { %v402_v46 = vadd.f32 %v401_v45, %v352_v32  ;;  %v487_v53 = vadd.f32 %v788_v39, %v410_v43 }
 0x122   :  { %v781_v51 = vpop.f32.mrf.mxu0 }
 0x123   :  { %v485_v54 = vadd.f32 %v470_v41, %v402_v46  ;;  %v413_v55 = vadd.f32 %v781_v51, %v773_v34  ;;  %v495_v0 = vmul.f32 %v487_v53, %v487_v53 }
 0x124   :  { %v404_v57 = vpop.f32.mrf.mxu0 }
 0x125   :  { %v488_v60 = vadd.f32 %v789_v50, %v413_v55  ;;  %v405_v61 = vadd.f32 %v404_v57, %v355_v36  ;;  %v493_v1 = vmul.f32 %v485_v54, %v485_v54  ;;  %v499_v9 = vadd.f32 %v495_v0, %v491_v4 }
 0x127   :  { %v496_v2 = vmul.f32 %v488_v60, %v488_v60  ;;  %v486_v3 = vadd.f32 %v473_v63, %v405_v61  ;;  %v497_v10 = vadd.f32 %v493_v1, %v489_v5 }
 0x129   :  { %v500_v7 = vadd.f32 %v496_v2, %v492_v62  ;;  %v494_v8 = vmul.f32 %v486_v3, %v486_v3 }
 0x12b   :  { %v498_v11 = vadd.f32 %v494_v8, %v490_v6  ;;  %v507_v12 = vmax.f32 %v499_v9, %v500_v7  ;;  %v958_v6 = vmov 0  }
 0x12d   :  { %v506_v13 = vmax.f32 %v497_v10, %v498_v11 }
 0x12f   :  { %v508_v14 = vmax.f32 %v506_v13, %v507_v12 }
 0x131   :  { %v509_v15 = vrot.slane %v508_v14, 4 }
 0x133   :  { %v510_v17 = vmax.f32 %v508_v14, %v509_v15 }
 0x135   :  { %v511_v18 = vrot.slane %v510_v17, 2 }
 0x137   :  { %v512_v20 = vmax.f32 %v510_v17, %v511_v18 }
 0x139   :  { %v513_v21 = vrot.slane %v512_v20, 1 }
 0x13b   :  { %v514_v25 = vmax.f32 %v512_v20, %v513_v21 }
 0x13d   :  { %vm515_vm1 = vcmp.eq.f32.partialorder %v497_v10, %v514_v25  ;;  %vm516_vm2 = vcmp.eq.f32.partialorder %v498_v11, %v514_v25  ;;  %vm517_vm3 = vcmp.eq.f32.partialorder %v499_v9, %v514_v25  ;;  %vm518_vm4 = vcmp.eq.f32.partialorder %v500_v7, %v514_v25 }
 0x13e   :  { %v519_v26 = vsel %vm515_vm1, %v1029_v19, 32  ;;  %v520_v27 = vsel %vm516_vm2, %v1032_v22, 32  ;;  %v521_v28 = vsel %vm517_vm3, %v1035_v23, 32  ;;  %v522_v29 = vsel %vm518_vm4, %v1038_v24, 32 }
 0x13f   :  { %vm523_vm5 = vcmp.lt.s32.totalorder %v519_v26, %v520_v27  ;;  %vm525_vm6 = vcmp.lt.s32.totalorder %v521_v28, %v522_v29 }
 0x140   :  { %v524_v30 = vsel %vm523_vm5, %v519_v26, %v520_v27  ;;  %v526_v31 = vsel %vm525_vm6, %v521_v28, %v522_v29 }
 0x141   :  { %vm527_vm7 = vcmp.lt.s32.totalorder %v524_v30, %v526_v31 }
 0x142   :  { %v528_v32 = vsel %vm527_vm7, %v524_v30, %v526_v31 }
 0x143   :  { %v529_v33 = vrot.slane %v528_v32, 4 }
 0x145   :  { %vm530_vm8 = vcmp.lt.s32.totalorder %v528_v32, %v529_v33 }
 0x146   :  { %v531_v34 = vsel %vm530_vm8, %v528_v32, %v529_v33 }
 0x147   :  { %v532_v35 = vrot.slane %v531_v34, 2 }
 0x149   :  { %vm533_vm9 = vcmp.lt.s32.totalorder %v531_v34, %v532_v35 }
 0x14a   :  { %v534_v36 = vsel %vm533_vm9, %v531_v34, %v532_v35 }
 0x14b   :  { %v535_v37 = vrot.slane %v534_v36, 1 }
 0x14d   :  { %vm536_vm10 = vcmp.lt.s32.totalorder %v534_v36, %v535_v37 }
 0x14e   :  { %v537_v38 = vsel %vm536_vm10, %v534_v36, %v535_v37 }
 0x14f   :  { %v1044_v39 = vadd.s32 1, %v537_v38  ;;  %vm559_vm11 = vcmp.eq.s32.totalorder %v1029_v19, %v537_v38  ;;  %vm560_vm12 = vcmp.eq.s32.totalorder %v1032_v22, %v537_v38  ;;  %vm561_vm13 = vcmp.eq.s32.totalorder %v1035_v23, %v537_v38 }
 0x150   :  { %vm562_vm14 = vcmp.eq.s32.totalorder %v1038_v24, %v537_v38  ;;  %v563_v40 = vsel %vm559_vm11, -inf, %v497_v10  ;;  %v564_v41 = vsel %vm560_vm12, -inf, %v498_v11  ;;  %v565_v42 = vsel %vm561_vm13, -inf, %v499_v9 }
 0x151   :  { %v566_v43 = vsel %vm562_vm14, -inf, %v500_v7  ;;  %v567_v44 = vmax.f32 %v563_v40, %v564_v41  ;;  %558 = vst [vmem:[#allocation11 + $0x3] sm:$0x1] %v1044_v39  ;;  %v539_v45 = vcvt.s32.f32 %v1044_v39 }
 0x152   :  { %v568_v46 = vmax.f32 %v565_v42, %v566_v43 }
 0x153   :  { %815 = vrcp.f32 %v539_v45 }
 0x154   :  { %v569_v47 = vmax.f32 %v567_v44, %v568_v46 }
 0x156   :  { %v570_v48 = vrot.slane %v569_v47, 4 }
 0x158   :  { %v571_v49 = vmax.f32 %v569_v47, %v570_v48 }
 0x15a   :  { %v572_v50 = vrot.slane %v571_v49, 2 }
 0x15c   :  { %v573_v51 = vmax.f32 %v571_v49, %v572_v50 }
 0x15e   :  { %v574_v52 = vrot.slane %v573_v51, 1 }
 0x160   :  { %v816_v53 = vpop.eup %815  ;;  %v575_v54 = vmax.f32 %v573_v51, %v574_v52 }
 0x161   :  { %v541_v55 = vmul.f32 32.0, %v816_v53 }
 0x162   :  { %vm576_vm15 = vcmp.eq.f32.partialorder %v563_v40, %v575_v54  ;;  %vm577_vm0 = vcmp.eq.f32.partialorder %v564_v41, %v575_v54  ;;  %vm578_vm1 = vcmp.eq.f32.partialorder %v565_v42, %v575_v54  ;;  %vm579_vm2 = vcmp.eq.f32.partialorder %v566_v43, %v575_v54 }
 0x163   :  { %v580_v56 = vsel %vm576_vm15, %v1029_v19, 32  ;;  %v581_v57 = vsel %vm577_vm0, %v1032_v22, 32  ;;  %v582_v58 = vsel %vm578_vm1, %v1035_v23, 32  ;;  %v583_v59 = vsel %vm579_vm2, %v1038_v24, 32 }
 0x164   :  { %vm584_vm3 = vcmp.lt.s32.totalorder %v580_v56, %v581_v57  ;;  %vm586_vm4 = vcmp.lt.s32.totalorder %v582_v58, %v583_v59  ;;  %v542_v60 = vfloor.f32 %v541_v55 }
 0x165   :  { %v585_v61 = vsel %vm584_vm3, %v580_v56, %v581_v57  ;;  %v587_v62 = vsel %vm586_vm4, %v582_v58, %v583_v59 }
 0x166   :  { %vm588_vm5 = vcmp.lt.s32.totalorder %v585_v61, %v587_v62  ;;  %v790_v63 = vtrunc.f32 %v542_v60 }
 0x167   :  { %v589_v0 = vsel %vm588_vm5, %v585_v61, %v587_v62 }
 0x168   :  { %v590_v1 = vrot.slane %v589_v0, 4  ;;  %v791_v2 = vcvt.f32.s32 %v790_v63 }
 0x16a   :  { %vm591_vm6 = vcmp.lt.s32.totalorder %v589_v0, %v590_v1  ;;  %v544_v3 = vmul.u32 %v791_v2, %v1044_v39 }
 0x16b   :  { %v592_v4 = vsel %vm591_vm6, %v589_v0, %v590_v1 }
 0x16c   :  { %v593_v5 = vrot.slane %v592_v4, 2  ;;  %vm545_vm7 = vcmp.gt.s32.totalorder %v544_v3, 32 }
 0x16d   :  { %v546_v7 = vsel %vm545_vm7, 1, %v958_v6 }
 0x16e   :  { %vm594_vm8 = vcmp.lt.s32.totalorder %v592_v4, %v593_v5  ;;  %v547_v8 = vsub.s32 %v791_v2, %v546_v7 }
 0x16f   :  { %v595_v9 = vsel %vm594_vm8, %v592_v4, %v593_v5 }
 0x170   :  { %v596_v10 = vrot.slane %v595_v9, 1  ;;  %v548_v11 = vadd.s32 1, %v547_v8 }
 0x172   :  { %vm597_vm9 = vcmp.lt.s32.totalorder %v595_v9, %v596_v10  ;;  %v549_v12 = vmul.u32 %v548_v11, %v1044_v39 }
 0x173   :  { %v598_v13 = vsel %vm597_vm9, %v595_v9, %v596_v10 }
 0x174   :  { %v1059_v14 = vadd.s32 1, %v598_v13  ;;  %vm620_vm10 = vcmp.eq.s32.totalorder %v1029_v19, %v598_v13  ;;  %vm621_vm11 = vcmp.eq.s32.totalorder %v1032_v22, %v598_v13  ;;  %vm622_vm12 = vcmp.eq.s32.totalorder %v1035_v23, %v598_v13 }
 0x175   :  { %vm623_vm13 = vcmp.eq.s32.totalorder %v1038_v24, %v598_v13  ;;  %v624_v15 = vsel %vm620_vm10, -inf, %v563_v40  ;;  %v625_v16 = vsel %vm621_vm11, -inf, %v564_v41  ;;  %v626_v17 = vsel %vm622_vm12, -inf, %v565_v42 }
 0x176   :  { %v627_v18 = vsel %vm623_vm13, -inf, %v566_v43  ;;  %v628_v20 = vmax.f32 %v624_v15, %v625_v16  ;;  %619 = vst [vmem:[#allocation11 + $0x4] sm:$0x1] %v1059_v14  ;;  %vm550_vm14 = vcmp.le.s32.totalorder %v549_v12, 32  ;;  %v600_v21 = vcvt.s32.f32 %v1059_v14 }
 0x177   :  { %v629_v25 = vmax.f32 %v626_v17, %v627_v18  ;;  %v551_v26 = vsel %vm550_vm14, 1, %v958_v6 }
 0x178   :  { %v552_v27 = vadd.s32 %v551_v26, %v547_v8  ;;  %817 = vrcp.f32 %v600_v21 }
 0x179   :  { %v630_v28 = vmax.f32 %v628_v20, %v629_v25 }
 0x17a   :  { %v553_v29 = vmul.u32 %v552_v27, %v1044_v39 }
 0x17b   :  { %v631_v30 = vrot.slane %v630_v28, 4 }
 0x17c   :  { %vm554_vm15 = vcmp.lt.s32.totalorder %v553_v29, 32 }
 0x17d   :  { %v632_v31 = vmax.f32 %v630_v28, %v631_v30  ;;  %v555_v32 = vsel %vm554_vm15, 1, %v958_v6 }
 0x17e   :  { %v556_v33 = vadd.s32 %v555_v32, %v552_v27 }
 0x17f   :  { %v633_v34 = vrot.slane %v632_v31, 2 }
 0x180   :  { %557 = vst [vmem:[#allocation11] sm:$0x1] %v556_v33 }
 0x181   :  { %v634_v35 = vmax.f32 %v632_v31, %v633_v34 }
 0x183   :  { %v635_v36 = vrot.slane %v634_v35, 1 }
 0x185   :  { %v818_v37 = vpop.eup %817  ;;  %v636_v38 = vmax.f32 %v634_v35, %v635_v36 }
 0x186   :  { %v602_v40 = vmul.f32 32.0, %v818_v37 }
 0x187   :  { %vm637_vm0 = vcmp.eq.f32.partialorder %v624_v15, %v636_v38  ;;  %vm638_vm1 = vcmp.eq.f32.partialorder %v625_v16, %v636_v38  ;;  %vm639_vm2 = vcmp.eq.f32.partialorder %v626_v17, %v636_v38  ;;  %vm640_vm3 = vcmp.eq.f32.partialorder %v627_v18, %v636_v38 }
 0x188   :  { %v641_v41 = vsel %vm637_vm0, %v1029_v19, 32  ;;  %v642_v39 = vsel %vm638_vm1, %v1032_v22, 32  ;;  %v643_v42 = vsel %vm639_vm2, %v1035_v23, 32  ;;  %v644_v43 = vsel %vm640_vm3, %v1038_v24, 32 }
 0x189   :  { %vm645_vm4 = vcmp.lt.s32.totalorder %v641_v41, %v642_v39  ;;  %vm647_vm5 = vcmp.lt.s32.totalorder %v643_v42, %v644_v43  ;;  %v603_v44 = vfloor.f32 %v602_v40 }
 0x18a   :  { %v646_v45 = vsel %vm645_vm4, %v641_v41, %v642_v39  ;;  %v648_v46 = vsel %vm647_vm5, %v643_v42, %v644_v43 }
 0x18b   :  { %vm649_vm6 = vcmp.lt.s32.totalorder %v646_v45, %v648_v46  ;;  %v792_v47 = vtrunc.f32 %v603_v44 }
 0x18c   :  { %v650_v48 = vsel %vm649_vm6, %v646_v45, %v648_v46 }
 0x18d   :  { %v651_v49 = vrot.slane %v650_v48, 4  ;;  %v793_v50 = vcvt.f32.s32 %v792_v47 }
 0x18f   :  { %vm652_vm7 = vcmp.lt.s32.totalorder %v650_v48, %v651_v49  ;;  %v605_v51 = vmul.u32 %v793_v50, %v1059_v14 }
 0x190   :  { %v653_v19 = vsel %vm652_vm7, %v650_v48, %v651_v49 }
 0x191   :  { %v654_v52 = vrot.slane %v653_v19, 2  ;;  %vm606_vm8 = vcmp.gt.s32.totalorder %v605_v51, 32 }
 0x192   :  { %v607_v22 = vsel %vm606_vm8, 1, %v958_v6 }
 0x193   :  { %vm655_vm9 = vcmp.lt.s32.totalorder %v653_v19, %v654_v52  ;;  %v608_v23 = vsub.s32 %v793_v50, %v607_v22 }
 0x194   :  { %v656_v24 = vsel %vm655_vm9, %v653_v19, %v654_v52 }
 0x195   :  { %v657_v53 = vrot.slane %v656_v24, 1  ;;  %v609_v54 = vadd.s32 1, %v608_v23 }
 0x197   :  { %vm658_vm10 = vcmp.lt.s32.totalorder %v656_v24, %v657_v53  ;;  %v610_v55 = vmul.u32 %v609_v54, %v1059_v14 }
 0x198   :  { %v659_v56 = vsel %vm658_vm10, %v656_v24, %v657_v53 }
 0x199   :  { %v660_v57 = vadd.s32 1, %v659_v56  ;;  %vm611_vm11 = vcmp.le.s32.totalorder %v610_v55, 32 }
 0x19a   :  { %v612_v58 = vsel %vm611_vm11, 1, %v958_v6 }
 0x19b   :  { %680 = vst [vmem:[#allocation11 + $0x5] sm:$0x1] %v660_v57  ;;  %v613_v59 = vadd.s32 %v612_v58, %v608_v23  ;;  %v661_v60 = vcvt.s32.f32 %v660_v57 }
 0x19d   :  { %v614_v61 = vmul.u32 %v613_v59, %v1059_v14  ;;  %819 = vrcp.f32 %v661_v60 }
 0x19f   :  { %vm615_vm12 = vcmp.lt.s32.totalorder %v614_v61, 32 }
 0x1a0   :  { %v616_v62 = vsel %vm615_vm12, 1, %v958_v6 }
 0x1a1   :  { %v617_v63 = vadd.s32 %v616_v62, %v613_v59 }
 0x1a3   :  { %618 = vst [vmem:[#allocation11 + $0x1] sm:$0x1] %v617_v63 }
 0x1aa   :  { %v820_v0 = vpop.eup %819 }
 0x1ab   :  { %v663_v1 = vmul.f32 32.0, %v820_v0 }
 0x1ad   :  { %v664_v2 = vfloor.f32 %v663_v1 }
 0x1af   :  { %v794_v3 = vtrunc.f32 %v664_v2 }
 0x1b1   :  { %v795_v4 = vcvt.f32.s32 %v794_v3 }
 0x1b3   :  { %v666_v5 = vmul.u32 %v795_v4, %v660_v57 }
 0x1b5   :  { %vm667_vm13 = vcmp.gt.s32.totalorder %v666_v5, 32 }
 0x1b6   :  { %v668_v7 = vsel %vm667_vm13, 1, %v958_v6 }
 0x1b7   :  { %v669_v8 = vsub.s32 %v795_v4, %v668_v7 }
 0x1b9   :  { %v670_v9 = vadd.s32 1, %v669_v8 }
 0x1bb   :  { %v671_v10 = vmul.u32 %v670_v9, %v660_v57 }
 0x1bd   :  { %vm672_vm14 = vcmp.le.s32.totalorder %v671_v10, 32 }
 0x1be   :  { %v673_v11 = vsel %vm672_vm14, 1, %v958_v6 }
 0x1bf   :  { %v674_v12 = vadd.s32 %v673_v11, %v669_v8 }
 0x1c1   :  { %v675_v13 = vmul.u32 %v674_v12, %v660_v57 }
 0x1c3   :  { %vm676_vm15 = vcmp.lt.s32.totalorder %v675_v13, 32 }
 0x1c4   :  { %v677_v14 = vsel %vm676_vm15, 1, %v958_v6 }
 0x1c5   :  { %v678_v15 = vadd.s32 %v677_v14, %v674_v12 }
 0x1c7   :  { %679 = vst [vmem:[#allocation11 + $0x2] sm:$0x1] %v678_v15 }
 0x1c8   :  { %932 = shalt.err (!%p929_p1)
}
 0x1c9   :  { %690 = dma.vmem_to_hbm [thread:$0]  %s688_s4, 128, %s1091_s5, [#allocation4]  }
 0x1ca   :  { %947 = dma.done.wait [#allocation4], 128  }
 0x1cb   :  { %948 = vsyncadd [#allocation4], 4294967168 }
 0x1cc   :  { %694 = vsyncpa [#allocation3], 1 }
 0x1cd   :  { %695 = vsyncpa [#allocation6], 1 }
 0x1ce   :  { %696 = vsyncpa [#allocation9], 1 }
 0x1cf   :  { %697 = vsyncpa [#allocation4], 1 }

</bundles_post_ra>
